<compile_context>
chip_gen: v5e
topology: v5e:2x2
jax: 0.10.0
libtpu: 0.0.40
codegen_flags: <defaults>
</compile_context>

<pallas_src>
import math
import functools

import jax
import jax.numpy as jnp
from jax.experimental import pallas as pl
from jax.experimental.pallas import tpu as pltpu


def _mhsa_kernel(x_ref, wqkv_ref, bqkv_ref, wout_ref, bout_ref, pad_ref, o_ref,
                 *, n_heads: int, head_dim: int, b_block: int, seq_len: int,
                 compute_dtype, approx_reciprocal: bool):
    """One grid step == one block of `b_block` batch elements (all heads inside)."""
    H, hd, Bb, T = n_heads, head_dim, b_block, seq_len
    C = H * hd
    N = Bb * T
    neg = float(jnp.finfo(jnp.float32).min)

    x = x_ref[...].astype(compute_dtype)            # (N, C)
    wqkv = wqkv_ref[...].astype(compute_dtype)      # (C, 3C)   Q block pre-scaled
    bqkv = bqkv_ref[...]                            # (1, 3C)   f32, Q block pre-scaled
    wout = wout_ref[...].astype(compute_dtype)      # (C, C)
    bout = bout_ref[...]                            # (1, C)    f32

    # --- fused, lane-dense QKV projection: one K=C matmul, output width 3C ---
    qkv = jnp.dot(x, wqkv, preferred_element_type=jnp.float32) + bqkv   # (N, 3C) f32

    # --- causal mask built in-kernel (no (B,T,T) HBM traffic) ---
    row = jax.lax.broadcasted_iota(jnp.int32, (T, T), 0)
    col = jax.lax.broadcasted_iota(jnp.int32, (T, T), 1)
    causal_keep = (row >= col)[None, :, :]                               # (1, T, T)

    # --- additive padding term, broadcast over query rows ---
    pad_add = (1.0 - pad_ref[...]) * neg                                 # (Bb, 1, T)

    # Per-head attention.  Static Python loop is fine at small H (fully unrolled);
    # TODO(synk): switch to lax.fori_loop / a head grid axis for production H.
    wv_heads = []
    for h in range(H):
        q = qkv[:, h * hd:(h + 1) * hd].reshape(Bb, T, hd)
        k = qkv[:, C + h * hd:C + (h + 1) * hd].reshape(Bb, T, hd)
        v = qkv[:, 2 * C + h * hd:2 * C + (h + 1) * hd].reshape(Bb, T, hd)

        # Scale already folded into the Q weights/bias in the wrapper.
        s = jnp.einsum('bqd,bkd->bqk',
                       q.astype(compute_dtype), k.astype(compute_dtype),
                       preferred_element_type=jnp.float32)               # (Bb, T, T)
        s = jnp.where(causal_keep, s, neg) + pad_add

        # Numerically stable softmax; all elementwise math kept in f32.
        m = jnp.max(s, axis=-1, keepdims=True)
        p = jnp.exp(s - m)
        denom = jnp.sum(p, axis=-1, keepdims=True)
        if approx_reciprocal:
            p = p * pl.reciprocal(denom, approx=True)    # EUP slot, frees VALU
        else:
            p = p / denom

        wv_heads.append(jnp.einsum('bqk,bkd->bqd',
                                   p.astype(compute_dtype), v.astype(compute_dtype),
                                   preferred_element_type=jnp.float32))  # (Bb, T, hd)

    # "concat heads" + ONE K=C output-projection matmul (instead of H K=hd matmuls).
    wv = jnp.concatenate(wv_heads, axis=-1).reshape(N, C)                # (N, C)
    y = jnp.dot(wv.astype(compute_dtype), wout,
                preferred_element_type=jnp.float32) + bout               # (N, C)
    o_ref[...] = y.astype(o_ref.dtype)


def masked_mhsa(x, w_qkv, b_qkv, w_out, b_out, attention_mask=None, *,
                n_heads: int, b_block: int | None = None,
                compute_dtype=jnp.float32, approx_reciprocal: bool = True):
    """x: (B, T, C) f32; attention_mask: (B, T) (1 = keep, 0 = mask) or None.

    w_qkv: (C, 3C), b_qkv: (3C,), w_out: (C, C), b_out: (C,)  (x @ W + b convention,
    i.e. the transpose of PyTorch's nn.Linear weight).
    b_block: batch elements per grid step.  Default max(1, B // 4) so the grid has
    >= 2 steps (DMA pipelining; both v7x TensorCores busy).
    """
    B, T, C = x.shape
    H = n_heads
    assert C % H == 0
    hd = C // H
    if b_block is None:
        b_block = max(1, B // 4)
        while B % b_block:
            b_block -= 1
    assert B % b_block == 0
    nb = B // b_block
    scale = 1.0 / math.sqrt(hd)

    # ---- one-time (per call) weight / mask prep, done in plain XLA (f32) ----
    w_r = w_qkv.at[:, :C].multiply(scale)                      # fold 1/sqrt(hd) into Q
    b_r = b_qkv.at[:C].multiply(scale).reshape(1, 3 * C)
    wo_r = w_out
    bo_r = b_out.reshape(1, C)

    if attention_mask is None:
        attention_mask = jnp.ones((B, T), dtype=jnp.float32)
    pad3 = attention_mask.astype(jnp.float32).reshape(B, 1, T)  # (B, 1, T) keep-flags

    x2 = x.reshape(B * T, C)                                    # lane-clean 2-D slab

    kernel = functools.partial(_mhsa_kernel, n_heads=H, head_dim=hd,
                               b_block=b_block, seq_len=T,
                               compute_dtype=compute_dtype,
                               approx_reciprocal=approx_reciprocal)

    out = pl.pallas_call(
        kernel,
        out_shape=jax.ShapeDtypeStruct((B * T, C), x.dtype),
        grid_spec=pltpu.PrefetchScalarGridSpec(
            num_scalar_prefetch=0,
            grid=(nb,),
            in_specs=[
                pl.BlockSpec((b_block * T, C), lambda i: (i, 0)),      # x block
                pl.BlockSpec((C, 3 * C), lambda i: (0, 0)),            # W_qkv (once)
                pl.BlockSpec((1, 3 * C), lambda i: (0, 0)),            # b_qkv (once)
                pl.BlockSpec((C, C), lambda i: (0, 0)),                # W_out (once)
                pl.BlockSpec((1, C), lambda i: (0, 0)),                # b_out (once)
                pl.BlockSpec((b_block, 1, T), lambda i: (i, 0, 0)),    # padding mask
            ],
            out_specs=pl.BlockSpec((b_block * T, C), lambda i: (i, 0)),
        ),
        compiler_params=pltpu.CompilerParams(
            dimension_semantics=("parallel",),
            vmem_limit_bytes=32 * 1024 * 1024),
    )(x2, w_r, b_r, wo_r, bo_r, pad3)

    return out.reshape(B, T, C)


def _reference(x, w_qkv, b_qkv, w_out, b_out, attention_mask, n_heads):
    """Plain-JAX reference mirroring the PyTorch forward."""
    B, T, C = x.shape
    hd = C // n_heads
    qkv = x @ w_qkv + b_qkv
    q, k, v = jnp.split(qkv, 3, axis=-1)

    def heads(t):  # (B, T, C) -> (B, H, T, hd)
        return t.reshape(B, T, n_heads, hd).transpose(0, 2, 1, 3)

    q, k, v = heads(q), heads(k), heads(v)
    att = (q @ jnp.swapaxes(k, -1, -2)) / math.sqrt(hd)
    causal = jnp.tril(jnp.ones((T, T)))[None, None]
    att = jnp.where(causal == 0, -jnp.inf, att)
    am = attention_mask[:, None, None, :]
    att = att + (1.0 - am) * jnp.finfo(att.dtype).min
    att = jax.nn.softmax(att, axis=-1)
    wv = (att @ v).transpose(0, 2, 1, 3).reshape(B, T, C)
    return wv @ w_out + b_out


if __name__ == "__main__":
    # Small config: embedding_dim=32, n_heads=4, block_size=T=8, use_bias=True,
    # dropout_rate=0.0, lora_rank=0.
    B, T, C, H = 2, 8, 32, 4

    key = jax.random.PRNGKey(0)
    k_x, k_wqkv, k_bqkv, k_wout, k_bout = jax.random.split(key, 5)

    x = jax.random.normal(k_x, (B, T, C), dtype=jnp.float32)
    bound = 1.0 / math.sqrt(C)
    w_qkv = jax.random.uniform(k_wqkv, (C, 3 * C), minval=-bound, maxval=bound, dtype=jnp.float32)
    b_qkv = jax.random.uniform(k_bqkv, (3 * C,), minval=-bound, maxval=bound, dtype=jnp.float32)
    w_out = jax.random.uniform(k_wout, (C, C), minval=-bound, maxval=bound, dtype=jnp.float32)
    b_out = jax.random.uniform(k_bout, (C,), minval=-bound, maxval=bound, dtype=jnp.float32)

    # attention_mask (B, T): pad out the last two tokens of the second sequence.
    attn_mask = jnp.ones((B, T), dtype=jnp.float32).at[1, -2:].set(0.0)

    y_ref = _reference(x, w_qkv, b_qkv, w_out, b_out, attn_mask, H)

    # 1) f32 compute, default b_block (>= 2 grid steps -> pipelined / 2 TCs on v7x).
    y = masked_mhsa(x, w_qkv, b_qkv, w_out, b_out, attn_mask, n_heads=H)
    y = jax.block_until_ready(y)
    # Tolerance accounts for the EUP approximate reciprocal in the softmax.
    assert jnp.allclose(y, y_ref, atol=1e-2, rtol=1e-2), "f32 kernel mismatch vs. reference"

    # 2) Single grid step variant (whole batch in one block).
    y2 = masked_mhsa(x, w_qkv, b_qkv, w_out, b_out, attn_mask, n_heads=H, b_block=B)
    y2 = jax.block_until_ready(y2)
    assert jnp.allclose(y2, y_ref, atol=1e-2, rtol=1e-2), "b_block=B kernel mismatch"

    # 3) bf16 MXU path (f32 accumulation, f32 softmax) with exact reciprocal.
    y3 = masked_mhsa(x, w_qkv, b_qkv, w_out, b_out, attn_mask, n_heads=H,
                     compute_dtype=jnp.bfloat16, approx_reciprocal=False)
    y3 = jax.block_until_ready(y3)
    assert jnp.allclose(y3, y_ref, atol=0.2, rtol=0.0), "bf16 kernel diverged from reference"

    # TODO(synk): attention/output dropout omitted (eval-mode / dropout_rate=0 semantics);
    # lora_rank>0 projection path not implemented.
    print("KERNEL_OK")
</pallas_src>

<mosaic_0001>
module attributes {stable_mosaic.version = 11 : i64} {
  func.func @_mhsa_kernel(%arg0: i32, %arg1: memref<8x32xf32, #tpu.memory_space<vmem>>, %arg2: memref<32x96xf32, #tpu.memory_space<vmem>>, %arg3: memref<1x96xf32, #tpu.memory_space<vmem>>, %arg4: memref<32x32xf32, #tpu.memory_space<vmem>>, %arg5: memref<1x32xf32, #tpu.memory_space<vmem>>, %arg6: memref<1x1x8xf32, #tpu.memory_space<vmem>>, %arg7: memref<8x32xf32, #tpu.memory_space<vmem>>) attributes {dimension_semantics = [#tpu.dimension_semantics<parallel>], iteration_bounds = array<i64: 2>, scalar_prefetch = 0 : i64, scratch_operands = 0 : i64, tpu.core_type = #tpu.core_type<tc>, window_params = [{transform_indices = @transform_0, window_bounds = array<i64: 8, 32>}, {pipeline_mode = #tpu.pipeline_mode<synchronous>, transform_indices = @transform_1, window_bounds = array<i64: 32, 96>}, {pipeline_mode = #tpu.pipeline_mode<synchronous>, transform_indices = @transform_2, window_bounds = array<i64: 1, 96>}, {pipeline_mode = #tpu.pipeline_mode<synchronous>, transform_indices = @transform_3, window_bounds = array<i64: 32, 32>}, {pipeline_mode = #tpu.pipeline_mode<synchronous>, transform_indices = @transform_4, window_bounds = array<i64: 1, 32>}, {transform_indices = @transform_5, window_bounds = array<i64: 1, 1, 8>}, {transform_indices = @transform_6, window_bounds = array<i64: 8, 32>}]} {
    %c0 = arith.constant 0 : index
    %c0_0 = arith.constant 0 : index
    %0 = vector.load %arg1[%c0, %c0_0] : memref<8x32xf32, #tpu.memory_space<vmem>>, vector<8x32xf32>
    %c0_1 = arith.constant 0 : index
    %c0_2 = arith.constant 0 : index
    %1 = vector.load %arg2[%c0_1, %c0_2] : memref<32x96xf32, #tpu.memory_space<vmem>>, vector<32x96xf32>
    %c0_3 = arith.constant 0 : index
    %c0_4 = arith.constant 0 : index
    %2 = vector.load %arg3[%c0_3, %c0_4] : memref<1x96xf32, #tpu.memory_space<vmem>>, vector<1x96xf32>
    %c0_5 = arith.constant 0 : index
    %c0_6 = arith.constant 0 : index
    %3 = vector.load %arg4[%c0_5, %c0_6] : memref<32x32xf32, #tpu.memory_space<vmem>>, vector<32x32xf32>
    %c0_7 = arith.constant 0 : index
    %c0_8 = arith.constant 0 : index
    %4 = vector.load %arg5[%c0_7, %c0_8] : memref<1x32xf32, #tpu.memory_space<vmem>>, vector<1x32xf32>
    %cst = arith.constant dense<0.000000e+00> : vector<8x96xf32>
    %5 = tpu.matmul %0, %1, %cst {dimension_numbers = #tpu.dot_dimension_numbers<[1], [0], [0], [1], [0, 0, 1, 1], [], []>} : vector<8x32xf32>, vector<32x96xf32>, vector<8x96xf32> -> vector<8x96xf32>
    %6 = vector.broadcast %2 : vector<1x96xf32> to vector<8x96xf32>
    %7 = arith.addf %5, %6 : vector<8x96xf32>
    %8 = tpu.iota {dimensions = array<i32: 0>} : vector<8x8xi32>
    %9 = tpu.iota {dimensions = array<i32: 1>} : vector<8x8xi32>
    %10 = arith.cmpi sge, %8, %9 : vector<8x8xi32>
    %11 = vector.shape_cast %10 : vector<8x8xi1> to vector<1x8x8xi1>
    %c0_9 = arith.constant 0 : index
    %c0_10 = arith.constant 0 : index
    %c0_11 = arith.constant 0 : index
    %12 = vector.load %arg6[%c0_9, %c0_10, %c0_11] : memref<1x1x8xf32, #tpu.memory_space<vmem>>, vector<1x1x8xf32>
    %cst_12 = arith.constant 1.000000e+00 : f32
    %13 = vector.broadcast %cst_12 : f32 to vector<1x1x8xf32>
    %14 = arith.subf %13, %12 : vector<1x1x8xf32>
    %cst_13 = arith.constant -3.40282347E+38 : f32
    %15 = vector.broadcast %cst_13 : f32 to vector<1x1x8xf32>
    %16 = arith.mulf %14, %15 : vector<1x1x8xf32>
    %17 = vector.extract_strided_slice %7 {offsets = [0, 0], sizes = [8, 8], strides = [1, 1]} : vector<8x96xf32> to vector<8x8xf32>
    %18 = vector.shape_cast %17 : vector<8x8xf32> to vector<1x8x8xf32>
    %19 = vector.extract_strided_slice %7 {offsets = [0, 32], sizes = [8, 8], strides = [1, 1]} : vector<8x96xf32> to vector<8x8xf32>
    %20 = vector.shape_cast %19 : vector<8x8xf32> to vector<1x8x8xf32>
    %21 = vector.extract_strided_slice %7 {offsets = [0, 64], sizes = [8, 8], strides = [1, 1]} : vector<8x96xf32> to vector<8x8xf32>
    %22 = vector.shape_cast %21 : vector<8x8xf32> to vector<1x8x8xf32>
    "tpu.trace_start"() <{level = 10 : i32, message = "bqd,bkd->bqk"}> : () -> ()
    %cst_14 = arith.constant dense<0.000000e+00> : vector<1x8x8xf32>
    %23 = tpu.matmul %18, %20, %cst_14 {dimension_numbers = #tpu.dot_dimension_numbers<[2], [2], [1], [1], [0, 0, 0, 1, 1, 1], [0], [0]>} : vector<1x8x8xf32>, vector<1x8x8xf32>, vector<1x8x8xf32> -> vector<1x8x8xf32>
    %cst_15 = arith.constant -3.40282347E+38 : f32
    "tpu.trace_stop"() : () -> ()
    %24 = vector.broadcast %cst_15 : f32 to vector<1x8x8xf32>
    %25 = arith.select %11, %23, %24 : vector<1x8x8xi1>, vector<1x8x8xf32>
    %26 = vector.broadcast %16 : vector<1x1x8xf32> to vector<1x8x8xf32>
    %27 = arith.addf %25, %26 : vector<1x8x8xf32>
    %cst_16 = arith.constant dense<0xFF800000> : vector<1x8xf32>
    %28 = vector.multi_reduction <maximumf>, %27, %cst_16 [2] : vector<1x8x8xf32> to vector<1x8xf32>
    %29 = vector.shape_cast %28 : vector<1x8xf32> to vector<1x8x1xf32>
    %30 = vector.broadcast %29 : vector<1x8x1xf32> to vector<1x8x8xf32>
    %31 = arith.subf %27, %30 : vector<1x8x8xf32>
    %32 = math.exp %31 : vector<1x8x8xf32>
    %cst_17 = arith.constant dense<0.000000e+00> : vector<1x8xf32>
    %33 = vector.multi_reduction <add>, %32, %cst_17 [2] : vector<1x8x8xf32> to vector<1x8xf32>
    %34 = vector.shape_cast %33 : vector<1x8xf32> to vector<1x8x1xf32>
    %35 = tpu.reciprocal %34 {approx = true} : vector<1x8x1xf32> -> vector<1x8x1xf32>
    %36 = vector.broadcast %35 : vector<1x8x1xf32> to vector<1x8x8xf32>
    %37 = arith.mulf %32, %36 : vector<1x8x8xf32>
    "tpu.trace_start"() <{level = 10 : i32, message = "bqk,bkd->bqd"}> : () -> ()
    %cst_18 = arith.constant dense<0.000000e+00> : vector<1x8x8xf32>
    %38 = tpu.matmul %37, %22, %cst_18 {dimension_numbers = #tpu.dot_dimension_numbers<[2], [1], [1], [2], [0, 0, 0, 1, 1, 2], [0], [0]>} : vector<1x8x8xf32>, vector<1x8x8xf32>, vector<1x8x8xf32> -> vector<1x8x8xf32>
    "tpu.trace_stop"() : () -> ()
    %39 = vector.extract_strided_slice %7 {offsets = [0, 8], sizes = [8, 8], strides = [1, 1]} : vector<8x96xf32> to vector<8x8xf32>
    %40 = vector.shape_cast %39 : vector<8x8xf32> to vector<1x8x8xf32>
    %41 = vector.extract_strided_slice %7 {offsets = [0, 40], sizes = [8, 8], strides = [1, 1]} : vector<8x96xf32> to vector<8x8xf32>
    %42 = vector.shape_cast %41 : vector<8x8xf32> to vector<1x8x8xf32>
    %43 = vector.extract_strided_slice %7 {offsets = [0, 72], sizes = [8, 8], strides = [1, 1]} : vector<8x96xf32> to vector<8x8xf32>
    %44 = vector.shape_cast %43 : vector<8x8xf32> to vector<1x8x8xf32>
    "tpu.trace_start"() <{level = 10 : i32, message = "bqd,bkd->bqk"}> : () -> ()
    %cst_19 = arith.constant dense<0.000000e+00> : vector<1x8x8xf32>
    %45 = tpu.matmul %40, %42, %cst_19 {dimension_numbers = #tpu.dot_dimension_numbers<[2], [2], [1], [1], [0, 0, 0, 1, 1, 1], [0], [0]>} : vector<1x8x8xf32>, vector<1x8x8xf32>, vector<1x8x8xf32> -> vector<1x8x8xf32>
    %cst_20 = arith.constant -3.40282347E+38 : f32
    "tpu.trace_stop"() : () -> ()
    %46 = vector.broadcast %cst_20 : f32 to vector<1x8x8xf32>
    %47 = arith.select %11, %45, %46 : vector<1x8x8xi1>, vector<1x8x8xf32>
    %48 = vector.broadcast %16 : vector<1x1x8xf32> to vector<1x8x8xf32>
    %49 = arith.addf %47, %48 : vector<1x8x8xf32>
    %cst_21 = arith.constant dense<0xFF800000> : vector<1x8xf32>
    %50 = vector.multi_reduction <maximumf>, %49, %cst_21 [2] : vector<1x8x8xf32> to vector<1x8xf32>
    %51 = vector.shape_cast %50 : vector<1x8xf32> to vector<1x8x1xf32>
    %52 = vector.broadcast %51 : vector<1x8x1xf32> to vector<1x8x8xf32>
    %53 = arith.subf %49, %52 : vector<1x8x8xf32>
    %54 = math.exp %53 : vector<1x8x8xf32>
    %cst_22 = arith.constant dense<0.000000e+00> : vector<1x8xf32>
    %55 = vector.multi_reduction <add>, %54, %cst_22 [2] : vector<1x8x8xf32> to vector<1x8xf32>
    %56 = vector.shape_cast %55 : vector<1x8xf32> to vector<1x8x1xf32>
    %57 = tpu.reciprocal %56 {approx = true} : vector<1x8x1xf32> -> vector<1x8x1xf32>
    %58 = vector.broadcast %57 : vector<1x8x1xf32> to vector<1x8x8xf32>
    %59 = arith.mulf %54, %58 : vector<1x8x8xf32>
    "tpu.trace_start"() <{level = 10 : i32, message = "bqk,bkd->bqd"}> : () -> ()
    %cst_23 = arith.constant dense<0.000000e+00> : vector<1x8x8xf32>
    %60 = tpu.matmul %59, %44, %cst_23 {dimension_numbers = #tpu.dot_dimension_numbers<[2], [1], [1], [2], [0, 0, 0, 1, 1, 2], [0], [0]>} : vector<1x8x8xf32>, vector<1x8x8xf32>, vector<1x8x8xf32> -> vector<1x8x8xf32>
    "tpu.trace_stop"() : () -> ()
    %61 = vector.extract_strided_slice %7 {offsets = [0, 16], sizes = [8, 8], strides = [1, 1]} : vector<8x96xf32> to vector<8x8xf32>
    %62 = vector.shape_cast %61 : vector<8x8xf32> to vector<1x8x8xf32>
    %63 = vector.extract_strided_slice %7 {offsets = [0, 48], sizes = [8, 8], strides = [1, 1]} : vector<8x96xf32> to vector<8x8xf32>
    %64 = vector.shape_cast %63 : vector<8x8xf32> to vector<1x8x8xf32>
    %65 = vector.extract_strided_slice %7 {offsets = [0, 80], sizes = [8, 8], strides = [1, 1]} : vector<8x96xf32> to vector<8x8xf32>
    %66 = vector.shape_cast %65 : vector<8x8xf32> to vector<1x8x8xf32>
    "tpu.trace_start"() <{level = 10 : i32, message = "bqd,bkd->bqk"}> : () -> ()
    %cst_24 = arith.constant dense<0.000000e+00> : vector<1x8x8xf32>
    %67 = tpu.matmul %62, %64, %cst_24 {dimension_numbers = #tpu.dot_dimension_numbers<[2], [2], [1], [1], [0, 0, 0, 1, 1, 1], [0], [0]>} : vector<1x8x8xf32>, vector<1x8x8xf32>, vector<1x8x8xf32> -> vector<1x8x8xf32>
    %cst_25 = arith.constant -3.40282347E+38 : f32
    "tpu.trace_stop"() : () -> ()
    %68 = vector.broadcast %cst_25 : f32 to vector<1x8x8xf32>
    %69 = arith.select %11, %67, %68 : vector<1x8x8xi1>, vector<1x8x8xf32>
    %70 = vector.broadcast %16 : vector<1x1x8xf32> to vector<1x8x8xf32>
    %71 = arith.addf %69, %70 : vector<1x8x8xf32>
    %cst_26 = arith.constant dense<0xFF800000> : vector<1x8xf32>
    %72 = vector.multi_reduction <maximumf>, %71, %cst_26 [2] : vector<1x8x8xf32> to vector<1x8xf32>
    %73 = vector.shape_cast %72 : vector<1x8xf32> to vector<1x8x1xf32>
    %74 = vector.broadcast %73 : vector<1x8x1xf32> to vector<1x8x8xf32>
    %75 = arith.subf %71, %74 : vector<1x8x8xf32>
    %76 = math.exp %75 : vector<1x8x8xf32>
    %cst_27 = arith.constant dense<0.000000e+00> : vector<1x8xf32>
    %77 = vector.multi_reduction <add>, %76, %cst_27 [2] : vector<1x8x8xf32> to vector<1x8xf32>
    %78 = vector.shape_cast %77 : vector<1x8xf32> to vector<1x8x1xf32>
    %79 = tpu.reciprocal %78 {approx = true} : vector<1x8x1xf32> -> vector<1x8x1xf32>
    %80 = vector.broadcast %79 : vector<1x8x1xf32> to vector<1x8x8xf32>
    %81 = arith.mulf %76, %80 : vector<1x8x8xf32>
    "tpu.trace_start"() <{level = 10 : i32, message = "bqk,bkd->bqd"}> : () -> ()
    %cst_28 = arith.constant dense<0.000000e+00> : vector<1x8x8xf32>
    %82 = tpu.matmul %81, %66, %cst_28 {dimension_numbers = #tpu.dot_dimension_numbers<[2], [1], [1], [2], [0, 0, 0, 1, 1, 2], [0], [0]>} : vector<1x8x8xf32>, vector<1x8x8xf32>, vector<1x8x8xf32> -> vector<1x8x8xf32>
    "tpu.trace_stop"() : () -> ()
    %83 = vector.extract_strided_slice %7 {offsets = [0, 24], sizes = [8, 8], strides = [1, 1]} : vector<8x96xf32> to vector<8x8xf32>
    %84 = vector.shape_cast %83 : vector<8x8xf32> to vector<1x8x8xf32>
    %85 = vector.extract_strided_slice %7 {offsets = [0, 56], sizes = [8, 8], strides = [1, 1]} : vector<8x96xf32> to vector<8x8xf32>
    %86 = vector.shape_cast %85 : vector<8x8xf32> to vector<1x8x8xf32>
    %87 = vector.extract_strided_slice %7 {offsets = [0, 88], sizes = [8, 8], strides = [1, 1]} : vector<8x96xf32> to vector<8x8xf32>
    %88 = vector.shape_cast %87 : vector<8x8xf32> to vector<1x8x8xf32>
    "tpu.trace_start"() <{level = 10 : i32, message = "bqd,bkd->bqk"}> : () -> ()
    %cst_29 = arith.constant dense<0.000000e+00> : vector<1x8x8xf32>
    %89 = tpu.matmul %84, %86, %cst_29 {dimension_numbers = #tpu.dot_dimension_numbers<[2], [2], [1], [1], [0, 0, 0, 1, 1, 1], [0], [0]>} : vector<1x8x8xf32>, vector<1x8x8xf32>, vector<1x8x8xf32> -> vector<1x8x8xf32>
    %cst_30 = arith.constant -3.40282347E+38 : f32
    "tpu.trace_stop"() : () -> ()
    %90 = vector.broadcast %cst_30 : f32 to vector<1x8x8xf32>
    %91 = arith.select %11, %89, %90 : vector<1x8x8xi1>, vector<1x8x8xf32>
    %92 = vector.broadcast %16 : vector<1x1x8xf32> to vector<1x8x8xf32>
    %93 = arith.addf %91, %92 : vector<1x8x8xf32>
    %cst_31 = arith.constant dense<0xFF800000> : vector<1x8xf32>
    %94 = vector.multi_reduction <maximumf>, %93, %cst_31 [2] : vector<1x8x8xf32> to vector<1x8xf32>
    %95 = vector.shape_cast %94 : vector<1x8xf32> to vector<1x8x1xf32>
    %96 = vector.broadcast %95 : vector<1x8x1xf32> to vector<1x8x8xf32>
    %97 = arith.subf %93, %96 : vector<1x8x8xf32>
    %98 = math.exp %97 : vector<1x8x8xf32>
    %cst_32 = arith.constant dense<0.000000e+00> : vector<1x8xf32>
    %99 = vector.multi_reduction <add>, %98, %cst_32 [2] : vector<1x8x8xf32> to vector<1x8xf32>
    %100 = vector.shape_cast %99 : vector<1x8xf32> to vector<1x8x1xf32>
    %101 = tpu.reciprocal %100 {approx = true} : vector<1x8x1xf32> -> vector<1x8x1xf32>
    %102 = vector.broadcast %101 : vector<1x8x1xf32> to vector<1x8x8xf32>
    %103 = arith.mulf %98, %102 : vector<1x8x8xf32>
    "tpu.trace_start"() <{level = 10 : i32, message = "bqk,bkd->bqd"}> : () -> ()
    %cst_33 = arith.constant dense<0.000000e+00> : vector<1x8x8xf32>
    %104 = tpu.matmul %103, %88, %cst_33 {dimension_numbers = #tpu.dot_dimension_numbers<[2], [1], [1], [2], [0, 0, 0, 1, 1, 2], [0], [0]>} : vector<1x8x8xf32>, vector<1x8x8xf32>, vector<1x8x8xf32> -> vector<1x8x8xf32>
    "tpu.trace_stop"() : () -> ()
    %105 = tpu.concatenate %38, %60, %82, %104 in 2 : vector<1x8x8xf32>, vector<1x8x8xf32>, vector<1x8x8xf32>, vector<1x8x8xf32> -> vector<1x8x32xf32>
    %106 = vector.shape_cast %105 : vector<1x8x32xf32> to vector<8x32xf32>
    %cst_34 = arith.constant dense<0.000000e+00> : vector<8x32xf32>
    %107 = tpu.matmul %106, %3, %cst_34 {dimension_numbers = #tpu.dot_dimension_numbers<[1], [0], [0], [1], [0, 0, 1, 1], [], []>} : vector<8x32xf32>, vector<32x32xf32>, vector<8x32xf32> -> vector<8x32xf32>
    %108 = vector.broadcast %4 : vector<1x32xf32> to vector<8x32xf32>
    %109 = arith.addf %107, %108 : vector<8x32xf32>
    %c0_35 = arith.constant 0 : index
    %c0_36 = arith.constant 0 : index
    %110 = vector.load %arg7[%c0_35, %c0_36] : memref<8x32xf32, #tpu.memory_space<vmem>>, vector<8x32xf32>
    tpu.vector_store %arg7[%c0_35, %c0_36], %109 {strides = array<i32>} : memref<8x32xf32, #tpu.memory_space<vmem>>, vector<8x32xf32>,
    return
  }
  func.func @transform_0(%arg0: i32) -> (i32, i32) {
    %c0_i32 = arith.constant 0 : i32
    %c0_i32_0 = arith.constant 0 : i32
    return %arg0, %c0_i32 : i32, i32
  }
  func.func @transform_1(%arg0: i32) -> (i32, i32) {
    %c0_i32 = arith.constant 0 : i32
    %c0_i32_0 = arith.constant 0 : i32
    %c0_i32_1 = arith.constant 0 : i32
    return %c0_i32, %c0_i32_0 : i32, i32
  }
  func.func @transform_2(%arg0: i32) -> (i32, i32) {
    %c0_i32 = arith.constant 0 : i32
    %c0_i32_0 = arith.constant 0 : i32
    %c0_i32_1 = arith.constant 0 : i32
    return %c0_i32, %c0_i32_0 : i32, i32
  }
  func.func @transform_3(%arg0: i32) -> (i32, i32) {
    %c0_i32 = arith.constant 0 : i32
    %c0_i32_0 = arith.constant 0 : i32
    %c0_i32_1 = arith.constant 0 : i32
    return %c0_i32, %c0_i32_0 : i32, i32
  }
  func.func @transform_4(%arg0: i32) -> (i32, i32) {
    %c0_i32 = arith.constant 0 : i32
    %c0_i32_0 = arith.constant 0 : i32
    %c0_i32_1 = arith.constant 0 : i32
    return %c0_i32, %c0_i32_0 : i32, i32
  }
  func.func @transform_5(%arg0: i32) -> (i32, i32, i32) {
    %c0_i32 = arith.constant 0 : i32
    %c0_i32_0 = arith.constant 0 : i32
    %c0_i32_1 = arith.constant 0 : i32
    return %arg0, %c0_i32, %c0_i32_0 : i32, i32, i32
  }
  func.func @transform_6(%arg0: i32) -> (i32, i32) {
    %c0_i32 = arith.constant 0 : i32
    %c0_i32_0 = arith.constant 0 : i32
    return %arg0, %c0_i32 : i32, i32
  }
}

</mosaic_0001>

<bundles_post_ra>
// kernel: tpu_custom_call.1
= control target key start
LH: loop header
LB: loop body
LE: loop exit
PB: predicated region body
PF: predicated region fallthrough
CT: control target
= control target key end

     0   :  { %11 = vsyncpa [#allocation3], 0  ;;  %s1419_s0 = inlined_call_operand.hbm [shape: f32[16,32], index: 0, kind: input, shape index: {}]   ;;  %s1420_s1 = inlined_call_operand.hbm [shape: f32[32,96], index: 1, kind: input, shape index: {}]   ;;  %s1421_s2 = inlined_call_operand.vmem [shape: f32[1,96], index: 2, kind: input, shape index: {}]   ;;  %s1422_s3 = inlined_call_operand.hbm [shape: f32[32,32], index: 3, kind: input, shape index: {}]   ;;  %s1423_s4 = inlined_call_operand.hbm [shape: f32[1,32], index: 4, kind: input, shape index: {}]   ;;  %s1424_s5 = inlined_call_operand.vmem [shape: f32[2,1,8], index: 5, kind: input, shape index: {}]   ;;  %s1425_s6 = inlined_call_operand.hbm [shape: f32[16,32], index: 6, kind: output, shape index: {}]  }
   0x1   :  { %13 = vsyncpa [#allocation3 + $0x1], 0 }
   0x2   :  { %14 = vsyncpa [#allocation6], 0 }
   0x3   :  { %15 = vsyncpa [#allocation9], 0 }
   0x4   :  { %16 = vsyncpa [#allocation4], 0 }
   0x5   :  { %18 = vsyncpa [#allocation4 + $0x1], 0  ;;  %s1209_s21 = smov 0   ;;  %s1211_s22 = smov 0  }
   0x6   :  { %s1213_s23 = smov 0   ;;  %s1215_s24 = smov 0  }
   0x7 LB: > { %s202_s27 = sshll.u32 %s1420_s1, 4  ;;  %s1233_s28 = sadd.s32 4294967295, %s1153_s24   ;;  %s1153_s24 = sphi %s1215_s24, %s1436_s24   ;;  %s1149_s23 = sphi %s1213_s23, %s1435_s23   ;;  %s1145_s22 = sphi %s1211_s22, %s1434_s22   ;;  %s1141_s21 = sphi %s1209_s21, %s1433_s21   ;;  %s203_s27 = int_to_ptr.hbm [resolvable:$true] %s202_s27 }
   0x8   : > { %p817_p0 = scmp.ge.s32.totalorder %s1153_s24, 1  ;;  %p45_p1 = scmp.eq.s32.totalorder %s1233_s28, 0 }
   0x9   : > { %p191_p2 = scmp.lt.s32.totalorder %s1153_s24, 3  ;;  %s1155_s30 = smov [#allocation5]  }
   0xa   : > { %s204_s7 = sshll.u32 %s1155_s30, 4  ;;  %s219_s10 = sshll.u32 %s1422_s3, 4  ;;  %s205_s7 = int_to_ptr.vmem [resolvable:$true] %s204_s7  ;;  %s220_s10 = int_to_ptr.hbm [resolvable:$true] %s219_s10 }
   0xb   : > { %p1238_p3 = pnand %p817_p0, %p191_p2  ;;  %s234_s14 = sshll.u32 %s1423_s4, 4  ;;  %s235_s14 = int_to_ptr.hbm [resolvable:$true] %s234_s14 }
   0xc   : > { %s1156_s15 = smov [#allocation7]   ;;  %s1157_s17 = smov 128  }
   0xd   : > { %p864_p4 = pneg %p1238_p3  ;;  %s221_s16 = sshll.u32 %s1156_s15, 4  ;;  %s222_s16 = int_to_ptr.vmem [resolvable:$true] %s221_s16 }
   0xe   : > { %s1158_s18 = smov 8   ;;  %s1159_s19 = smov [#allocation8]  }
   0xf   : > { %p1250_p6 = pnand %p864_p4, %p45_p1  ;;  %s236_s20 = sshll.u32 %s1159_s19, 4  ;;  %s237_s20 = int_to_ptr.vmem [resolvable:$true] %s236_s20 }
  0x10   : > { %s816_s25 = sadd.s32 4294967294, %s1153_s24   ;;  %s1265_s26 = sadd.s32 1, %s1153_s24  }
  0x11   : > { %867 = dma.hbm_to_vmem [thread:$0]  (!%p1250_p6), %s203_s27, 512, %s205_s7, [#allocation6], %s1157_s17, %s1157_s17, %s1158_s18  }
  0x12   : > { %870 = dma.hbm_to_vmem [thread:$0]  (!%p1250_p6), %s220_s10, 512, %s222_s16, [#allocation6], %s1157_s17, %s1157_s17, %s1158_s18  }
  0x13   : > { %873 = dma.hbm_to_vmem [thread:$0]  (!%p1250_p6), %s235_s14, 16, %s237_s20, [#allocation9]  }
  0x14   : > { %s31_s30 = sadd.s32 1, %s1149_s23  ;;  %s28_s27 = ssub.s32 %s1153_s24, %s1265_s26 }
  0x15   : > { %p38_p7 = scmp.ne.s32.totalorder %s1149_s23, %s1145_s22  ;;  %p29_p8 = scmp.eq.s32.totalorder %s28_s27, 0 }
  0x16   : > { %p39_p9 = scmp.eq.s32.totalorder %s1153_s24, 0  ;;  %p44_p10 = scmp.ne.s32.totalorder %s1145_s22, %s1141_s21 }
  0x17   : > { %p178_p11 = scmp.eq.s32.totalorder %s1233_s28, 1  ;;  %p184_p0 = scmp.eq.s32.totalorder %s816_s25, 1 }
  0x18   : > { %s1277_s7 = scalar_select %p29_p8, %s1149_s23, %s31_s30  }
  0x19   : > { %p1281_p12 = por %p45_p1, %p44_p10  ;;  %p1285_p13 = por %p178_p11, %p38_p7 }
  0x1a   : > { %p40_p2 = por %p39_p9, %p38_p7  ;;  %s247_s10 = sand.u32 1, %s1149_s23  }
  0x1b   : > { %p1290_p4 = por %p184_p0, %p44_p10  ;;  %p885_p6 = scmp.lt.s32.totalorder %s1153_s24, 2 }
  0x1c   : > { %s822_s12 = sshll.u32 %s247_s10, 3  ;;  %s823_s13 = sshll.u32 %s1153_s24, 3 }
  0x1d   : > { %s255_s16 = scalar_lea.hbm %s1419_s0, %s823_s13  ;;  %s251_s18 = scalar_lea.vmem [#allocation2], %s822_s12 }
  0x1e   : > { %s257_s17 = sshll.u32 %s255_s16, 4  ;;  %s259_s19 = sshll.u32 %s251_s18, 4  ;;  %s258_s17 = int_to_ptr.hbm [resolvable:$true] %s257_s17  ;;  %s260_s19 = int_to_ptr.vmem [resolvable:$true] %s259_s19 }
  0x1f   : > { %p1299_p8 = pnand %p885_p6, %p40_p2  ;;  %s248_s25 = scalar_lea.sflag [#allocation3], %s247_s10 }
  0x20   : > { %s1049_s30 = sshra.s32 %s258_s17, 4  ;;  %s1056_s12 = scalar_lea.hbm %s1419_s0, 16  ;;  %s1050_s30 = int_to_ptr.hbm [resolvable:$true] %s1049_s30 }
  0x21   : > { %s1051_s27 = scalar_lea.hbm %s1050_s30, 8  ;;  %p1053_p9 = pneg %p1299_p8 }
  0x22   : > { %p1052_p7 = scmp.ne.s32.totalorder %s1050_s30, %s1051_s27  ;;  %p1057_p0 = scmp.lt.s32.totalorder %s1050_s30, %s1419_s0 }
  0x23   : > { %p1058_p2 = scmp.lt.s32.totalorder %s1056_s12, %s1051_s27 }
  0x24   : > { %p1054_p10 = pnand %p1053_p9, %p1052_p7 }
  0x25   : > { %p1059_p6 = por %p1058_p2, %p1057_p0 }
  0x26   : > { %p1055_p11 = pneg %p1054_p10 }
  0x28   : > { %p1060_p5 = pnand %p1059_p6, %p1055_p11 }
  0x2a   : > { %1063 = shalt.err (!%p1060_p5)
}
  0x2b   : > { %877 = dma.hbm_to_vmem [thread:$0]  (!%p1299_p8), %s258_s17, 128, %s260_s19, %s248_s25  }
  0x2c   : > { %274 = sbr.rel (%p1238_p3) target bundleno = 1109 (0x455), region = 44  ;;  %s1316_s10 = sand.u32 (!%p1238_p3), 1, %s1145_s22  }
  0x2d   : > { %s825_s18 = sshll.u32 (!%p1238_p3), %s1316_s10, 3  ;;  %s277_s13 = scalar_lea.sflag (!%p1238_p3), [#allocation3], %s1316_s10 }
  0x2e   : > { %s280_s30 = scalar_lea.vmem (!%p1238_p3), [#allocation2], %s825_s18 }
  0x31   : > { %1124 = dma.done.wait (%p1281_p12), %s277_s13, 128  }
  0x32   : > { %1126 = vsyncadd (%p1281_p12), %s277_s13, 4294967168 }
  0x33   : > { %1128 = dma.done.wait (%p45_p1), [#allocation6], 1024  }
  0x34   : > { %1130 = vsyncadd (%p45_p1), [#allocation6], 4294966272 }
  0x35   : > { %1132 = dma.done.wait (%p45_p1), [#allocation9], 16  }
  0x36   : > { %1134 = vsyncadd (%p45_p1), [#allocation9], 4294967280  ;;  %v335_v0 = vld [vmem:[#allocation5 + $0x18] sm:$0xff]  ;;  %v334_v1 = vld [vmem:[#allocation5 + $0x10] sm:$0xff]  ;;  %vm345_vm0 = vcmask 261120   ;;  %s1160_s17 = smov 72   ;;  %v369_v16 = vlaneseq }
  0x37   : > { %361 = vmatpush.msra.mxu0 %v335_v0  ;;  %v333_v2 = vld [vmem:[#allocation5 + $0x8] sm:$0xff]  ;;  %v332_v3 = vld [vmem:[#allocation5] sm:$0xff]  ;;  %v331_v4 = vld [vmem:[%s280_s30] sm:$0xff]  ;;  %s1161_s19 = smov 120   ;;  %s1162_s20 = smov 96   ;;  %vm380_vm1 = vcmask 64512  }
  0x38   : > { %v941_v5 = vld [vmem:[%s1421_s2] ss:$0 sm:$0xff]  ;;  %s1163_s25 = smov 112   ;;  %s1164_s27 = smov 80   ;;  %v370_v18 = vshrl.u32 %v369_v16, 7  ;;  %v372_v19 = vand.u32 127, %v369_v16 }
  0x39   : > { %362 = vmatpush.msra.mxu0 %v334_v1  ;;  %s1165_s14 = smov 88   ;;  %s1166_s12 = smov 104   ;;  %v338_v16 = vld [vmem:[#allocation7 + $0x8] sm:$0xff]  ;;  %vm661_vm3 = vcmask 130048   ;;  %vm663_vm4 = vcmask 195584  }
  0x3a   : > { %p328_p1 = scmp.lt.s32.totalorder %s1233_s28, 1  ;;  %vm373_vm2 = vcmp.ge.s32.totalorder %v370_v18, %v372_v19  ;;  %s1167_s29 = smov 64  }
  0x3b   : > { %363 = vmatpush.msra.mxu0 %v333_v2  ;;  %s1168_s8 = smov 40   ;;  %s327_s13 = scalar_lea.vmem [#allocation10], %s825_s18 }
  0x3c   : > { %s329_s15 = scalar_select %p328_p1, %s1233_s28, 1 }
  0x3d   : > { %364 = vmatpush.msra.mxu0 %v332_v3  ;;  %s1099_s18 = scalar_lea.hbm %s1425_s6, 16 }
  0x3e   : > { %830 = vmatmul.msk.f32.vlgmr.msra.gmra.mxu0 %vm345_vm0, %v331_v4  ;;  %s330_s30 = scalar_lea.vmem %s1424_s5, %s329_s15 }
  0x3f   : > { %v374_v15 = vld [vmem:[%s330_s30] sm:$0x1]  ;;  %s705_s30 = sshll.u32 %s327_s13, 4  ;;  %s706_s30 = int_to_ptr.vmem [resolvable:$true] %s705_s30 }
  0x40   : > { %v375_v17 = vsub.f32 1.0, %v374_v15  ;;  %v339_v15 = vld [vmem:[#allocation7 + $0x10] sm:$0xff] }
  0x42   : > { %v376_v20 = vmul.f32 -3.4028235e+38, %v375_v17  ;;  %v337_v17 = vld [vmem:[#allocation7] sm:$0xff] }
  0x44   : > { %v407_v21 = vperm.slane %v376_v20, 0 }
  0xbb   : > { %v366_v6 = vpop.f32.mrf.mxu0 }
  0xbc   : > { %v1338_v7 = vadd.f32 %v941_v5, %v366_v6 }
  0xbe   : > { %583 = vrot.lane.b32.xlu2 %v1338_v7, %s1160_s17  ;;  %447 = vrot.lane.b32.xlu1 %v1338_v7, %s1161_s19  ;;  %s1169_s17 = smov 56   ;;  %s1170_s19 = smov 48  }
  0xbf   : > { %378 = vrot.lane.b32.xlu0 %v1338_v7, %s1162_s20  ;;  %s1171_s20 = smov 16  }
  0xc6   : > { %514 = vrot.lane.b32.xlu2 %v1338_v7, %s1163_s25  ;;  %516 = vrot.lane.b32.xlu1 %v1338_v7, %s1164_s27  ;;  %s1172_s25 = smov 8   ;;  %s1173_s27 = smov 24  }
  0xc7   : > { %449 = vrot.lane.b32.xlu0 %v1338_v7, %s1165_s14  ;;  %s845_s14 = sshll.u32 %s1233_s28, 3 }
  0xc8   : > { %s703_s16 = scalar_lea.hbm %s1425_s6, %s845_s14 }
  0xcf   : > { %581 = vrot.lane.b32.xlu0 %v1338_v7, %s1166_s12 }
 0x118   : > { %v584_v8 = vpop.permute.xlu2 %583 }
 0x119   : > { %840 = vmatpush.xpose.msk.msrb.mxu0 %vm380_vm1, %v584_v8 }
 0x120   : > { %v515_v13 = vpop.permute.xlu2 %514 }
 0x130   : > { %v448_v9 = vpop.permute.xlu1 %447 }
 0x131   : > { %v379_v10 = vpop.permute.xlu0 %378 }
 0x132   : > { %831 = vmatpush.xpose.msk.msra.mxu1 %vm380_vm1, %v379_v10 }
 0x135   : > { %832 = vmatmul.msk.f32.vlgmr.msra.gmra.mxu1 %vm380_vm1, %v1338_v7 }
 0x138   : > { %v517_v11 = vpop.permute.xlu1 %516 }
 0x139   : > { %v450_v12 = vpop.permute.xlu0 %449  ;;  %837 = vmatpush.xpose.msk.msrb.mxu1 %vm380_vm1, %v517_v11 }
 0x13a   : > { %834 = vmatpush.xpose.msk.msra.mxu3 %vm380_vm1, %v450_v12 }
 0x13d   : > { %835 = vmatmul.msk.f32.vlgmr.msra.gmra.mxu3 %vm380_vm1, %v448_v9  ;;  %838 = vmatmul.msk.f32.vlgmr.msrb.gmra.mxu1 %vm380_vm1, %v515_v13 }
 0x141   : > { %v582_v14 = vpop.permute.xlu0 %581 }
 0x142   : > { %841 = vmatmul.msk.f32.vlgmr.msrb.gmra.mxu0 %vm380_vm1, %v582_v14  ;;  %v340_v14 = vld [vmem:[#allocation7 + $0x18] sm:$0xff] }
 0x143   : > { %683 = vmatpush.msra.mxu1 %v340_v14 }
 0x145   : > { %684 = vmatpush.msra.mxu1 %v339_v15 }
 0x147   : > { %685 = vmatpush.msra.mxu1 %v338_v16 }
 0x149   : > { %686 = vmatpush.msra.mxu1 %v337_v17 }
 0x1b2   : > { %v402_v22 = vpop.f32.mrf.mxu1 }
 0x1b3   : > { %v405_v23 = vsel %vm373_vm2, %v402_v22, -3.4028235e+38 }
 0x1b4   : > { %v409_v24 = vadd.f32 %v407_v21, %v405_v23 }
 0x1b6   : > { %v410_v25 = vsel %vm380_vm1, %v409_v24, -inf }
 0x1b7   : > { %411 = vmax.xlane.f32.xlu1 %v410_v25 }
 0x1ba   : > { %v539_v26 = vpop.f32.mrf.mxu1 }
 0x1bb   : > { %v542_v27 = vsel %vm373_vm2, %v539_v26, -3.4028235e+38 }
 0x1bc   : > { %v543_v28 = vadd.f32 %v542_v27, %v407_v21 }
 0x1be   : > { %v544_v29 = vsel %vm380_vm1, %v543_v28, -inf }
 0x1bf   : > { %545 = vmax.xlane.f32.xlu0 %v544_v29  ;;  %v606_v32 = vpop.f32.mrf.mxu0 }
 0x1c0   : > { %v472_v30 = vpop.f32.mrf.mxu3  ;;  %v609_v35 = vsel %vm373_vm2, %v606_v32, -3.4028235e+38 }
 0x1c1   : > { %v475_v31 = vsel %vm373_vm2, %v472_v30, -3.4028235e+38  ;;  %v610_v36 = vadd.f32 %v609_v35, %v407_v21 }
 0x1c2   : > { %v476_v33 = vadd.f32 %v475_v31, %v407_v21 }
 0x1c3   : > { %v611_v37 = vsel %vm380_vm1, %v610_v36, -inf }
 0x1c4   : > { %v477_v34 = vsel %vm380_vm1, %v476_v33, -inf }
 0x1c5   : > { %478 = vmax.xlane.f32.xlu2 %v477_v34 }
 0x1cd   : > { %612 = vmax.xlane.f32.xlu2 %v611_v37 }
 0x1d3   : > { %421 = vrot.lane.b32.xlu0 %v1338_v7, %s1167_s29  ;;  %s707_s29 = sshll.u32 %s703_s16, 4  ;;  %s708_s29 = int_to_ptr.hbm [resolvable:$true] %s707_s29 }
 0x1db   : > { %622 = vrot.lane.b32.xlu0 %v1338_v7, %s1168_s8  ;;  %s693_s8 = scalar_lea.sflag [#allocation4], %s1316_s10 }
 0x22a   : > { %v412_v38 = vpop.xlane.xlu1 %411 }
 0x22b   : > { %v413_v39 = vsub.f32 %v409_v24, %v412_v38  ;;  %v942_v24 = vld [vmem:[#allocation8] ss:$0 sm:$0xff] }
 0x22d   : > { %v414_v40 = vmul.f32 1.442695, %v413_v39 }
 0x22f   : > { %943 = vpow2.f32 %v414_v40 }
 0x232   : > { %v546_v41 = vpop.xlane.xlu0 %545 }
 0x233   : > { %v547_v42 = vsub.f32 %v543_v28, %v546_v41 }
 0x235   : > { %v944_v43 = vpop.eup %943  ;;  %v548_v44 = vmul.f32 1.442695, %v547_v42 }
 0x236   : > { %v416_v45 = vsel %vm380_vm1, %v944_v43, 0.0 }
 0x237   : > { %945 = vpow2.f32 %v548_v44  ;;  %417 = vadd.xlane.f32.xlu1 %v416_v45 }
 0x238   : > { %v479_v46 = vpop.xlane.xlu2 %478 }
 0x239   : > { %v480_v51 = vsub.f32 %v476_v33, %v479_v46 }
 0x23b   : > { %v481_v54 = vmul.f32 1.442695, %v480_v51 }
 0x23d   : > { %v946_v47 = vpop.eup %945 }
 0x23e   : > { %v550_v48 = vsel %vm380_vm1, %v946_v47, 0.0 }
 0x23f   : > { %551 = vadd.xlane.f32.xlu1 %v550_v48 }
 0x240   : > { %v613_v49 = vpop.xlane.xlu2 %612 }
 0x241   : > { %v614_v50 = vsub.f32 %v610_v36, %v613_v49 }
 0x243   : > { %v615_v52 = vmul.f32 1.442695, %v614_v50 }
 0x245   : > { %947 = vpow2.f32 %v615_v52  ;;  %v422_v53 = vpop.permute.xlu0 %421 }
 0x246   : > { %442 = vmatpush.msra.mxu2 %v422_v53  ;;  %949 = vpow2.f32 %v481_v54 }
 0x24b   : > { %v948_v55 = vpop.eup %947 }
 0x24c   : > { %v617_v56 = vsel %vm380_vm1, %v948_v55, 0.0  ;;  %v950_v57 = vpop.eup %949 }
 0x24d   : > { %618 = vadd.xlane.f32.xlu2 %v617_v56  ;;  %v483_v58 = vsel %vm380_vm1, %v950_v57, 0.0  ;;  %v623_v2 = vpop.permute.xlu0 %622 }
 0x255   : > { %484 = vadd.xlane.f32.xlu2 %v483_v58 }
 0x258   : > { %488 = vrot.lane.b32.xlu1 %v1338_v7, %s1169_s17  ;;  %s1093_s17 = sshra.s32 %s708_s29, 4  ;;  %s1094_s17 = int_to_ptr.hbm [resolvable:$true] %s1093_s17 }
 0x259   : > { %s1095_s28 = scalar_lea.hbm %s1094_s17, 8  ;;  %p1100_p8 = scmp.lt.s32.totalorder %s1094_s17, %s1425_s6 }
 0x25a   : > { %p1096_p3 = scmp.ne.s32.totalorder %s1094_s17, %s1095_s28  ;;  %p1101_p7 = scmp.lt.s32.totalorder %s1099_s18, %s1095_s28 }
 0x25c   : > { %p1097_p5 = pnand %p1096_p3, %p1285_p13  ;;  %p1102_p9 = por %p1101_p7, %p1100_p8 }
 0x25e   : > { %p1098_p12 = pneg %p1097_p5 }
 0x260   : > { %p1103_p10 = pnand %p1102_p9, %p1098_p12 }
 0x26d   : > { %555 = vrot.lane.b32.xlu2 %v1338_v7, %s1170_s19 }
 0x2aa   : > { %v418_v59 = vpop.xlane.xlu1 %417 }
 0x2ab   : > { %951 = vrcp.f32 %v418_v59 }
 0x2b1   : > { %v952_v60 = vpop.eup %951 }
 0x2b2   : > { %v420_v61 = vmul.f32 %v952_v60, %v944_v43  ;;  %v552_v63 = vpop.xlane.xlu1 %551 }
 0x2b3   : > { %953 = vrcp.f32 %v552_v63 }
 0x2b4   : > { %833 = vmatmul.msk.f32.vlgmr.msra.gmra.mxu2 %vm380_vm1, %v420_v61 }
 0x2b9   : > { %v954_v3 = vpop.eup %953 }
 0x2ba   : > { %v554_v7 = vmul.f32 %v954_v3, %v946_v47 }
 0x2c0   : > { %v619_v62 = vpop.xlane.xlu2 %618 }
 0x2c8   : > { %v485_v0 = vpop.xlane.xlu2 %484 }
 0x2c9   : > { %955 = vrcp.f32 %v485_v0 }
 0x2ca   : > { %v489_v1 = vpop.permute.xlu1 %488  ;;  %957 = vrcp.f32 %v619_v62 }
 0x2cb   : > { %509 = vmatpush.msrb.mxu2 %v489_v1 }
 0x2cd   : > { %643 = vmatpush.msra.mxu2 %v623_v2 }
 0x2cf   : > { %v956_v4 = vpop.eup %955 }
 0x2d0   : > { %v556_v5 = vpop.permute.xlu2 %555  ;;  %v487_v6 = vmul.f32 %v956_v4, %v950_v57  ;;  %v958_v8 = vpop.eup %957 }
 0x2d1   : > { %576 = vmatpush.msrb.mxu3 %v556_v5  ;;  %v621_v9 = vmul.f32 %v958_v8, %v948_v55 }
 0x2d2   : > { %836 = vmatmul.msk.f32.vlgmr.msrb.gmra.mxu2 %vm380_vm1, %v487_v6  ;;  %839 = vmatmul.msk.f32.vlgmr.msrb.gmra.mxu3 %vm380_vm1, %v554_v7 }
 0x2da   : > { %842 = vmatmul.msk.f32.vlgmr.msra.gmra.mxu2 %vm380_vm1, %v621_v9 }
 0x337   : > { %v444_v10 = vpop.f32.mrf.mxu2 }
 0x355   : > { %v511_v11 = vpop.f32.mrf.mxu2  ;;  %v578_v12 = vpop.f32.mrf.mxu3 }
 0x356   : > { %653 = vrot.lane.b32.xlu1 %v578_v12, %s1171_s20  ;;  %649 = vrot.lane.b32.xlu0 %v511_v11, %s1172_s25 }
 0x35d   : > { %v645_v13 = vpop.f32.mrf.mxu2 }
 0x35e   : > { %657 = vrot.lane.b32.xlu0 %v645_v13, %s1173_s27 }
 0x3c8   : > { %v650_v18 = vpop.permute.xlu0 %649  ;;  %v654_v19 = vpop.permute.xlu1 %653 }
 0x3c9   : > { %v660_v20 = vsel %vm380_vm1, %v444_v10, %v650_v18 }
 0x3ca   : > { %v662_v21 = vsel %vm661_vm3, %v660_v20, %v654_v19 }
 0x3d0   : > { %v658_v22 = vpop.permute.xlu0 %657 }
 0x3d1   : > { %v664_v23 = vsel %vm663_vm4, %v662_v21, %v658_v22 }
 0x3d2   : > { %843 = vmatmul.msk.f32.vlgmr.msra.gmra.mxu1 %vm345_vm0, %v664_v23 }
 0x44f   : > { %v688_v25 = vpop.f32.mrf.mxu1 }
 0x450   : > { %v689_v26 = vadd.f32 %v942_v24, %v688_v25 }
 0x452   : > { %691 = vst.msk [vmem:[%s327_s13] sm:$0xff] %vm345_vm0, %v689_v26 }
 0x453   : > { %1106 = shalt.err (!%p1103_p10)
}
 0x454   : > { %862 = dma.vmem_to_hbm [thread:$0]  (%p1285_p13), %s706_s30, 128, %s708_s29, %s693_s8  }
 0x455 PF: > { %s719_s10 = sand.u32 1, %s1141_s21   ;;  %p1432_p11 = scmp.ge.s32.totalorder %s1153_s24, 2 }
 0x456   : > { %s720_s14 = scalar_lea.sflag [#allocation4], %s719_s10 }
 0x457   : > { %p879_p0 = pnand %p1432_p11, %p1290_p4 }
 0x459   : > { %p880_p2 = pneg %p879_p0 }
 0x45b   : > { %1136 = dma.done.wait (%p880_p2), %s720_s14, 128  }
 0x45c   : > { %1138 = vsyncadd (%p880_p2), %s720_s14, 4294967168  ;;  %p21_p6 = scmp.ge.s32.totalorder %s1265_s26, 4   ;;  %s1433_s21 = smov %s1145_s22 }
 0x45d   : > { %s1434_s22 = smov %s1149_s23  ;;  %s1435_s23 = smov %s1277_s7 }
 0x45e   : > { %s1436_s24 = smov %s1265_s26  ;;  %23 = sbr.rel (!%p21_p6) target bundleno = 7 (0x7), region = 104 }
 0x463   :  { %726 = vsyncpa [#allocation3], 1 }
 0x464   :  { %728 = vsyncpa [#allocation3 + $0x1], 1 }
 0x465   :  { %729 = vsyncpa [#allocation6], 1 }
 0x466   :  { %730 = vsyncpa [#allocation9], 1 }
 0x467   :  { %731 = vsyncpa [#allocation4], 1 }
 0x468   :  { %733 = vsyncpa [#allocation4 + $0x1], 1 }

</bundles_post_ra>
